<compile_context>
chip_gen: v6e
topology: v6e:2x2x1
jax: 0.10.0
libtpu: 0.0.40
codegen_flags: <defaults>
</compile_context>

<pallas_src>
import jax
import jax.numpy as jnp
from jax import lax
from jax.experimental import pallas as pl
from jax.experimental.pallas import tpu as pltpu


def _gated_residual_up_kernel(xm_ref, xtop_ref, xbot_ref, wbig_ref, w1_ref,
                              bnb_ref, b1_ref, out_ref, xpad_s, xcat_s):
    TH, W, C = xm_ref.shape[1], xm_ref.shape[2], xm_ref.shape[3]
    Cout = out_ref.shape[4] // 2
    wdt = xpad_s.dtype

    # ---- assemble the row-halo tile (TH+2, W, C) in VMEM, already in matmul dtype -----
    xpad_s[1:TH + 1] = xm_ref[0].astype(wdt)
    xpad_s[0:1] = xtop_ref[0].astype(wdt)
    xpad_s[TH + 1:TH + 2] = xbot_ref[0].astype(wdt)
    xp = xpad_s[...]

    # ---- up branch: 1x1 conv commuted ahead of the bilinear (both linear) -------------
    # project only W columns (row-dim merge stays layout-friendly; no W+2 relayout)
    p = jnp.dot(xp.reshape((TH + 2) * W, C), w1_ref[...],
                preferred_element_type=jnp.float32)
    # bilinear weights sum to 1, so the bias can be added once, before the blends
    p = (p + b1_ref[...]).reshape(TH + 2, W, Cout)

    # left/right edge replication in Cout space, then separable bilinear x2
    # (align_corners=False): 2 horizontal blends, lane-concat, 2 vertical blends.
    p_l = jnp.concatenate([p[:, 0:1], p[:, :W - 1]], axis=1)     # x[:, max(j-1,0)]
    p_r = jnp.concatenate([p[:, 1:], p[:, W - 1:W]], axis=1)     # x[:, min(j+1,W-1)]
    h = jnp.concatenate([0.75 * p + 0.25 * p_l,                  # even output columns
                         0.75 * p + 0.25 * p_r], axis=-1)        # odd output columns
    up0 = 0.75 * h[1:TH + 1] + 0.25 * h[0:TH]                    # even output rows [ee|eo]
    up1 = 0.75 * h[1:TH + 1] + 0.25 * h[2:TH + 2]                # odd  output rows [oe|oo]

    # ---- residual branch: ConvTranspose2d + BN(scale folded) + ReLU --------------------
    # one packed matmul: K packs the 4 taps (4*C), N packs the 4 sub-pixel phases (4*Cout).
    # Zero column / zero last-row replace the old full-tile masks (tiny stores instead of
    # three O(TH*W*C) multiply passes).
    zcol = jnp.zeros((TH, 1, C), dtype=wdt)
    xcat_s[:, :, 0 * C:1 * C] = xp[1:TH + 1]                                       # x[i,   j  ]
    xcat_s[:, :, 1 * C:2 * C] = jnp.concatenate([xp[1:TH + 1, 1:], zcol], axis=1)  # x[i,   j+1]
    xcat_s[:, :, 2 * C:3 * C] = xp[2:TH + 2]                                       # x[i+1, j  ]
    xcat_s[:, :, 3 * C:4 * C] = jnp.concatenate([xp[2:TH + 2, 1:], zcol], axis=1)  # x[i+1, j+1]

    # the bottom halo of the LAST tile is edge-replicated (needed by the bilinear), but the
    # transposed conv needs an implicit zero just past the image edge -> zero that one row.
    @pl.when(pl.program_id(1) == pl.num_programs(1) - 1)
    def _():
        xcat_s[TH - 1:TH, :, 2 * C:4 * C] = jnp.zeros((1, W, 2 * C), dtype=wdt)

    r = jnp.dot(xcat_s[...].reshape(TH * W, 4 * C), wbig_ref[...],
                preferred_element_type=jnp.float32)
    residual = jnp.maximum(r + bnb_ref[...], 0.0).reshape(TH, W, 4 * Cout)  # BN shift + ReLU

    # ---- combine: out = ReLU(up + residual); dense 2*Cout-wide stores per row phase -----
    out_ref[0, :, 0, :, :] = jnp.maximum(
        up0 + residual[:, :, :2 * Cout], 0.0).astype(out_ref.dtype)
    out_ref[0, :, 1, :, :] = jnp.maximum(
        up1 + residual[:, :, 2 * Cout:], 0.0).astype(out_ref.dtype)


def _vmem_plan():
    """Generation-aware VMEM sizing: (vmem_limit_bytes, per-step working-set budget)."""
    try:
        cap = int(pltpu.get_tpu_info().vmem_capacity_bytes)   # 128 MiB v5e/v6e, 64 MiB v7x
    except Exception:
        cap = 64 * 1024 * 1024
    vmem_limit = min(cap * 3 // 4, 100 * 1024 * 1024)          # ~96 MiB v5e/v6e, 48 MiB v7x
    tile_budget = vmem_limit * 3 // 5                          # headroom for compiler scratch
    return vmem_limit, tile_budget


def _pick_tile_rows(H, W, C, Cout, budget_bytes, *, x_itemsize=4, out_itemsize=4,
                    mm_itemsize=2, batch=1, min_grid_steps=4):
    """Largest divisor of H whose per-step working set (including the double-buffered
    input/output blocks) fits the budget, capped so the grid keeps >= min_grid_steps
    steps (keeps both v7x TensorCores busy)."""
    per_row = (2 * W * C * x_itemsize                 # input block (double-buffered)
               + 2 * 4 * W * Cout * out_itemsize      # output block (·,2,W,2*Cout) x2 buffers
               + 5 * W * C * mm_itemsize              # xpad + xcat scratches
               + 18 * W * Cout * 4)                   # f32 temporaries (p, h, up, residual)
    fixed = (4 * W * C * x_itemsize                   # halo blocks
             + (4 * C) * (4 * Cout) * mm_itemsize * 2  # weights
             + (1 << 16))
    avail = max(budget_bytes - fixed, per_row)
    th = max(1, min(H, avail // per_row))
    target_nt = min(H, max(1, -(-min_grid_steps // max(batch, 1))))
    th = min(th, max(1, H // target_nt))
    while H % th:
        th -= 1
    return int(th)


def init_params(key, in_channels):
    c = in_channels
    co = c // 2
    k1, k2, k3 = jax.random.split(key, 3)
    return dict(
        # ConvTranspose2d weight: (Cin, Cout, kH, kW), no bias
        wt_pt=0.1 * jax.random.normal(k1, (c, co, 3, 3), jnp.float32),
        # Conv2d 1x1 weight: (Cout, Cin, 1, 1) + bias
        w1_pt=0.1 * jax.random.normal(k2, (co, c, 1, 1), jnp.float32),
        b1=0.1 * jax.random.normal(k3, (co,), jnp.float32),
        bn_gamma=1.0 + 0.1 * jnp.arange(co, dtype=jnp.float32),
        bn_beta=0.05 * jnp.arange(co, dtype=jnp.float32),
        bn_mean=0.02 * jnp.arange(co, dtype=jnp.float32),
        bn_var=1.0 + 0.03 * jnp.arange(co, dtype=jnp.float32),
    )


def gated_residual_up_nhwc(x_nhwc, params, *, eps=1e-5, tile_rows=None,
                           matmul_dtype=jnp.bfloat16, min_grid_steps=4):
    """NHWC core (a real model should stay NHWC end-to-end to skip boundary transposes)."""
    N, H, W, C = x_nhwc.shape
    assert C % 2 == 0
    Cout = C // 2
    vmem_limit, tile_budget = _vmem_plan()
    if tile_rows is None:
        TH = _pick_tile_rows(H, W, C, Cout, tile_budget,
                             x_itemsize=x_nhwc.dtype.itemsize,
                             out_itemsize=x_nhwc.dtype.itemsize,
                             mm_itemsize=jnp.dtype(matmul_dtype).itemsize,
                             batch=N, min_grid_steps=min_grid_steps)
    else:
        TH = tile_rows
    assert 1 <= TH <= H and H % TH == 0, "tile_rows must divide H"
    nT = H // TH

    # ---- parameter prep (tiny arrays) ----
    wt = jnp.transpose(params["wt_pt"], (2, 3, 0, 1)).astype(jnp.float32)   # (3,3,C,Cout)
    z = jnp.zeros((C, Cout), jnp.float32)
    # ConvTranspose2d(k3,s2,p1,op1) phase decomposition packed into one (4C, 4Cout) matrix:
    #   rows = taps   [x(i,j) | x(i,j+1) | x(i+1,j) | x(i+1,j+1)]
    #   cols = phases [y(2i,2j) | y(2i,2j+1) | y(2i+1,2j) | y(2i+1,2j+1)]
    wbig = jnp.concatenate([
        jnp.concatenate([wt[1, 1], wt[1, 2], wt[2, 1], wt[2, 2]], axis=1),
        jnp.concatenate([z,        wt[1, 0], z,        wt[2, 0]], axis=1),
        jnp.concatenate([z,        z,        wt[0, 1], wt[0, 2]], axis=1),
        jnp.concatenate([z,        z,        z,        wt[0, 0]], axis=1),
    ], axis=0)

    bn_scale = params["bn_gamma"] / jnp.sqrt(params["bn_var"] + eps)
    bn_shift = params["bn_beta"] - params["bn_mean"] * bn_scale
    wbig = (wbig * jnp.tile(bn_scale, 4)[None, :]).astype(matmul_dtype)     # fold BN scale
    bnb4 = jnp.tile(bn_shift, 4).reshape(1, 4 * Cout).astype(jnp.float32)
    w1 = jnp.transpose(params["w1_pt"][:, :, 0, 0], (1, 0)).astype(matmul_dtype)  # (C, Cout)
    b1 = params["b1"].reshape(1, Cout).astype(jnp.float32)

    out_packed = pl.pallas_call(
        _gated_residual_up_kernel,
        out_shape=jax.ShapeDtypeStruct((N, H, 2, W, 2 * Cout), x_nhwc.dtype),
        grid_spec=pltpu.PrefetchScalarGridSpec(
            num_scalar_prefetch=0,
            grid=(N, nT),
            in_specs=[
                # row tile + 1-row clamped halos, fetched straight from the unpadded input
                pl.BlockSpec((1, TH, W, C), lambda n, t: (n, t, 0, 0)),
                pl.BlockSpec((1, 1, W, C),
                             lambda n, t: (n, jnp.maximum(t * TH - 1, 0), 0, 0)),
                pl.BlockSpec((1, 1, W, C),
                             lambda n, t: (n, jnp.minimum((t + 1) * TH, H - 1), 0, 0)),
                pl.BlockSpec((4 * C, 4 * Cout), lambda n, t: (0, 0)),
                pl.BlockSpec((C, Cout), lambda n, t: (0, 0)),
                pl.BlockSpec((1, 4 * Cout), lambda n, t: (0, 0)),
                pl.BlockSpec((1, Cout), lambda n, t: (0, 0)),
            ],
            out_specs=pl.BlockSpec((1, TH, 2, W, 2 * Cout),
                                   lambda n, t: (n, t, 0, 0, 0)),
            scratch_shapes=[
                pltpu.VMEM((TH + 2, W, C), matmul_dtype),   # row-halo input tile
                pltpu.VMEM((TH, W, 4 * C), matmul_dtype),   # packed-K conv taps
            ],
        ),
        compiler_params=pltpu.CompilerParams(
            dimension_semantics=("parallel", "parallel"),
            vmem_limit_bytes=int(vmem_limit),
        ),
    )(x_nhwc, x_nhwc, x_nhwc, wbig, w1, bnb4, b1)

    # (N, H, 2, W, 2*Cout) -> (N, 2H, 2W, Cout): adjacent-dim merges only => pure reshape,
    # no extra HBM transpose pass over the upsampled output.
    return out_packed.reshape(N, 2 * H, 2 * W, Cout)


def gated_residual_up(x_nchw, params, **kwargs):
    """PyTorch-parity wrapper (NCHW in / NCHW out); the transposes are boundary glue."""
    x = jnp.transpose(x_nchw, (0, 2, 3, 1))
    y = gated_residual_up_nhwc(x, params, **kwargs)
    return jnp.transpose(y, (0, 3, 1, 2))


# ---------------- pure-JAX reference (independent formulation) ----------------
def _bilinear_up2_indices(size):
    o = jnp.arange(2 * size, dtype=jnp.float32)
    src = jnp.maximum((o + 0.5) * 0.5 - 0.5, 0.0)     # PyTorch align_corners=False
    i0 = jnp.floor(src).astype(jnp.int32)
    lam = src - i0.astype(jnp.float32)
    i1 = jnp.minimum(i0 + 1, size - 1)
    return i0, i1, lam


def gated_residual_up_reference(x_nchw, params, eps=1e-5):
    # residual branch: ConvTranspose2d(s=2,p=1,op=1) == lhs-dilated conv with flipped kernel
    w_flip = jnp.flip(params["wt_pt"], axis=(2, 3)).transpose(1, 0, 2, 3)   # (Cout, C, 3, 3)
    r = lax.conv_general_dilated(
        x_nchw, w_flip, window_strides=(1, 1),
        padding=((1, 2), (1, 2)), lhs_dilation=(2, 2),
        dimension_numbers=("NCHW", "OIHW", "NCHW"),
        precision=lax.Precision.HIGHEST)
    scale = params["bn_gamma"] / jnp.sqrt(params["bn_var"] + eps)
    shift = params["bn_beta"] - params["bn_mean"] * scale
    residual = jax.nn.relu(r * scale[None, :, None, None] + shift[None, :, None, None])

    # up branch: bilinear x2 then 1x1 conv + bias
    N, C, H, W = x_nchw.shape
    i0, i1, lh = _bilinear_up2_indices(H)
    j0, j1, lw = _bilinear_up2_indices(W)
    xh = (jnp.take(x_nchw, i0, axis=2) * (1 - lh)[None, None, :, None]
          + jnp.take(x_nchw, i1, axis=2) * lh[None, None, :, None])
    up_bl = (jnp.take(xh, j0, axis=3) * (1 - lw)[None, None, None, :]
             + jnp.take(xh, j1, axis=3) * lw[None, None, None, :])
    w1 = params["w1_pt"][:, :, 0, 0]                       # (Cout, C)
    up = jnp.einsum("nchw,oc->nohw", up_bl, w1,
                    precision=lax.Precision.HIGHEST) + params["b1"][None, :, None, None]

    return jax.nn.relu(up + residual)


if __name__ == "__main__":
    key = jax.random.PRNGKey(0)
    kx, kp = jax.random.split(key)
    N, C, H, W = 2, 4, 16, 16
    x = jax.random.normal(kx, (N, C, H, W), jnp.float32)
    params = init_params(kp, C)

    ref = gated_residual_up_reference(x, params)

    # exact-math path (f32 MXU operands), spatially tiled: grid = (N, H // 4)
    out_f32 = jax.block_until_ready(
        gated_residual_up(x, params, matmul_dtype=jnp.float32, tile_rows=4))
    assert out_f32.shape == (N, C // 2, 2 * H, 2 * W)
    err = float(jnp.max(jnp.abs(out_f32 - ref)))
    if err > 2e-2:
        raise AssertionError(f"f32 kernel/reference mismatch: max abs err = {err}")

    # default path (bf16 MXU operands, f32 accumulation/elementwise), auto tile size
    out_bf16 = jax.block_until_ready(gated_residual_up(x, params))
    assert out_bf16.shape == (N, C // 2, 2 * H, 2 * W)
    err16 = float(jnp.max(jnp.abs(out_bf16 - ref)))
    if err16 > 6e-2:
        raise AssertionError(f"bf16 kernel/reference mismatch: max abs err = {err16}")

    print("KERNEL_OK")
</pallas_src>

<mosaic_0001>
module attributes {stable_mosaic.version = 11 : i64} {
  func.func @_gated_residual_up_kernel(%arg0: i32, %arg1: i32, %arg2: memref<1x4x16x4xf32, #tpu.memory_space<vmem>>, %arg3: memref<1x1x16x4xf32, #tpu.memory_space<vmem>>, %arg4: memref<1x1x16x4xf32, #tpu.memory_space<vmem>>, %arg5: memref<16x8xf32, #tpu.memory_space<vmem>>, %arg6: memref<4x2xf32, #tpu.memory_space<vmem>>, %arg7: memref<1x8xf32, #tpu.memory_space<vmem>>, %arg8: memref<1x2xf32, #tpu.memory_space<vmem>>, %arg9: memref<1x4x2x16x4xf32, #tpu.memory_space<vmem>>, %arg10: memref<6x16x4xf32, #tpu.memory_space<vmem>>, %arg11: memref<4x16x16xf32, #tpu.memory_space<vmem>>) attributes {dimension_semantics = [#tpu.dimension_semantics<parallel>, #tpu.dimension_semantics<parallel>], iteration_bounds = array<i64: 2, 4>, scalar_prefetch = 0 : i64, scratch_operands = 2 : i64, tpu.core_type = #tpu.core_type<tc>, window_params = [{transform_indices = @transform_0, window_bounds = array<i64: 1, 4, 16, 4>}, {transform_indices = @transform_1, window_bounds = array<i64: 1, 1, 16, 4>}, {transform_indices = @transform_2, window_bounds = array<i64: 1, 1, 16, 4>}, {pipeline_mode = #tpu.pipeline_mode<synchronous>, transform_indices = @transform_3, window_bounds = array<i64: 16, 8>}, {pipeline_mode = #tpu.pipeline_mode<synchronous>, transform_indices = @transform_4, window_bounds = array<i64: 4, 2>}, {pipeline_mode = #tpu.pipeline_mode<synchronous>, transform_indices = @transform_5, window_bounds = array<i64: 1, 8>}, {pipeline_mode = #tpu.pipeline_mode<synchronous>, transform_indices = @transform_6, window_bounds = array<i64: 1, 2>}, {transform_indices = @transform_7, window_bounds = array<i64: 1, 4, 2, 16, 4>}]} {
    %c0 = arith.constant 0 : index
    %c0_0 = arith.constant 0 : index
    %c0_1 = arith.constant 0 : index
    %c0_2 = arith.constant 0 : index
    %0 = vector.load %arg2[%c0, %c0_0, %c0_1, %c0_2] : memref<1x4x16x4xf32, #tpu.memory_space<vmem>>, vector<1x4x16x4xf32>
    %1 = vector.shape_cast %0 : vector<1x4x16x4xf32> to vector<4x16x4xf32>
    %c1 = arith.constant 1 : index
    %c0_3 = arith.constant 0 : index
    %c0_4 = arith.constant 0 : index
    %2 = vector.load %arg10[%c1, %c0_3, %c0_4] : memref<6x16x4xf32, #tpu.memory_space<vmem>>, vector<4x16x4xf32>
    tpu.vector_store %arg10[%c1, %c0_3, %c0_4], %1 {strides = array<i32>} : memref<6x16x4xf32, #tpu.memory_space<vmem>>, vector<4x16x4xf32>,
    %c0_5 = arith.constant 0 : index
    %c0_6 = arith.constant 0 : index
    %c0_7 = arith.constant 0 : index
    %c0_8 = arith.constant 0 : index
    %3 = vector.load %arg3[%c0_5, %c0_6, %c0_7, %c0_8] : memref<1x1x16x4xf32, #tpu.memory_space<vmem>>, vector<1x1x16x4xf32>
    %4 = vector.shape_cast %3 : vector<1x1x16x4xf32> to vector<1x16x4xf32>
    %c0_9 = arith.constant 0 : index
    %c0_10 = arith.constant 0 : index
    %c0_11 = arith.constant 0 : index
    %5 = vector.load %arg10[%c0_9, %c0_10, %c0_11] : memref<6x16x4xf32, #tpu.memory_space<vmem>>, vector<1x16x4xf32>
    tpu.vector_store %arg10[%c0_9, %c0_10, %c0_11], %4 {strides = array<i32>} : memref<6x16x4xf32, #tpu.memory_space<vmem>>, vector<1x16x4xf32>,
    %c0_12 = arith.constant 0 : index
    %c0_13 = arith.constant 0 : index
    %c0_14 = arith.constant 0 : index
    %c0_15 = arith.constant 0 : index
    %6 = vector.load %arg4[%c0_12, %c0_13, %c0_14, %c0_15] : memref<1x1x16x4xf32, #tpu.memory_space<vmem>>, vector<1x1x16x4xf32>
    %7 = vector.shape_cast %6 : vector<1x1x16x4xf32> to vector<1x16x4xf32>
    %c5 = arith.constant 5 : index
    %c0_16 = arith.constant 0 : index
    %c0_17 = arith.constant 0 : index
    %8 = vector.load %arg10[%c5, %c0_16, %c0_17] : memref<6x16x4xf32, #tpu.memory_space<vmem>>, vector<1x16x4xf32>
    tpu.vector_store %arg10[%c5, %c0_16, %c0_17], %7 {strides = array<i32>} : memref<6x16x4xf32, #tpu.memory_space<vmem>>, vector<1x16x4xf32>,
    %c0_18 = arith.constant 0 : index
    %c0_19 = arith.constant 0 : index
    %c0_20 = arith.constant 0 : index
    %9 = vector.load %arg10[%c0_18, %c0_19, %c0_20] : memref<6x16x4xf32, #tpu.memory_space<vmem>>, vector<6x16x4xf32>
    %10 = vector.shape_cast %9 : vector<6x16x4xf32> to vector<96x4xf32>
    %c0_21 = arith.constant 0 : index
    %c0_22 = arith.constant 0 : index
    %11 = vector.load %arg6[%c0_21, %c0_22] : memref<4x2xf32, #tpu.memory_space<vmem>>, vector<4x2xf32>
    %cst = arith.constant dense<0.000000e+00> : vector<96x2xf32>
    %12 = tpu.matmul %10, %11, %cst {dimension_numbers = #tpu.dot_dimension_numbers<[1], [0], [0], [1], [0, 0, 1, 1], [], []>} : vector<96x4xf32>, vector<4x2xf32>, vector<96x2xf32> -> vector<96x2xf32>
    %c0_23 = arith.constant 0 : index
    %c0_24 = arith.constant 0 : index
    %13 = vector.load %arg8[%c0_23, %c0_24] : memref<1x2xf32, #tpu.memory_space<vmem>>, vector<1x2xf32>
    %14 = vector.broadcast %13 : vector<1x2xf32> to vector<96x2xf32>
    %15 = arith.addf %12, %14 : vector<96x2xf32>
    %16 = vector.shape_cast %15 : vector<96x2xf32> to vector<6x16x2xf32>
    %17 = vector.extract_strided_slice %16 {offsets = [0, 0, 0], sizes = [6, 1, 2], strides = [1, 1, 1]} : vector<6x16x2xf32> to vector<6x1x2xf32>
    %18 = vector.extract_strided_slice %16 {offsets = [0, 0, 0], sizes = [6, 15, 2], strides = [1, 1, 1]} : vector<6x16x2xf32> to vector<6x15x2xf32>
    %19 = tpu.concatenate %17, %18 in 1 : vector<6x1x2xf32>, vector<6x15x2xf32> -> vector<6x16x2xf32>
    %20 = vector.extract_strided_slice %16 {offsets = [0, 1, 0], sizes = [6, 15, 2], strides = [1, 1, 1]} : vector<6x16x2xf32> to vector<6x15x2xf32>
    %21 = vector.extract_strided_slice %16 {offsets = [0, 15, 0], sizes = [6, 1, 2], strides = [1, 1, 1]} : vector<6x16x2xf32> to vector<6x1x2xf32>
    %22 = tpu.concatenate %20, %21 in 1 : vector<6x15x2xf32>, vector<6x1x2xf32> -> vector<6x16x2xf32>
    %cst_25 = arith.constant 7.500000e-01 : f32
    %23 = vector.broadcast %cst_25 : f32 to vector<6x16x2xf32>
    %24 = arith.mulf %23, %16 : vector<6x16x2xf32>
    %cst_26 = arith.constant 2.500000e-01 : f32
    %25 = vector.broadcast %cst_26 : f32 to vector<6x16x2xf32>
    %26 = arith.mulf %25, %19 : vector<6x16x2xf32>
    %27 = arith.addf %24, %26 : vector<6x16x2xf32>
    %cst_27 = arith.constant 7.500000e-01 : f32
    %28 = vector.broadcast %cst_27 : f32 to vector<6x16x2xf32>
    %29 = arith.mulf %28, %16 : vector<6x16x2xf32>
    %cst_28 = arith.constant 2.500000e-01 : f32
    %30 = vector.broadcast %cst_28 : f32 to vector<6x16x2xf32>
    %31 = arith.mulf %30, %22 : vector<6x16x2xf32>
    %32 = arith.addf %29, %31 : vector<6x16x2xf32>
    %33 = tpu.concatenate %27, %32 in 2 : vector<6x16x2xf32>, vector<6x16x2xf32> -> vector<6x16x4xf32>
    %34 = vector.extract_strided_slice %33 {offsets = [1, 0, 0], sizes = [4, 16, 4], strides = [1, 1, 1]} : vector<6x16x4xf32> to vector<4x16x4xf32>
    %cst_29 = arith.constant 7.500000e-01 : f32
    %35 = vector.broadcast %cst_29 : f32 to vector<4x16x4xf32>
    %36 = arith.mulf %35, %34 : vector<4x16x4xf32>
    %37 = vector.extract_strided_slice %33 {offsets = [0, 0, 0], sizes = [4, 16, 4], strides = [1, 1, 1]} : vector<6x16x4xf32> to vector<4x16x4xf32>
    %cst_30 = arith.constant 2.500000e-01 : f32
    %38 = vector.broadcast %cst_30 : f32 to vector<4x16x4xf32>
    %39 = arith.mulf %38, %37 : vector<4x16x4xf32>
    %40 = arith.addf %36, %39 : vector<4x16x4xf32>
    %41 = vector.extract_strided_slice %33 {offsets = [1, 0, 0], sizes = [4, 16, 4], strides = [1, 1, 1]} : vector<6x16x4xf32> to vector<4x16x4xf32>
    %cst_31 = arith.constant 7.500000e-01 : f32
    %42 = vector.broadcast %cst_31 : f32 to vector<4x16x4xf32>
    %43 = arith.mulf %42, %41 : vector<4x16x4xf32>
    %44 = vector.extract_strided_slice %33 {offsets = [2, 0, 0], sizes = [4, 16, 4], strides = [1, 1, 1]} : vector<6x16x4xf32> to vector<4x16x4xf32>
    %cst_32 = arith.constant 2.500000e-01 : f32
    %45 = vector.broadcast %cst_32 : f32 to vector<4x16x4xf32>
    %46 = arith.mulf %45, %44 : vector<4x16x4xf32>
    %47 = arith.addf %43, %46 : vector<4x16x4xf32>
    %cst_33 = arith.constant 0.000000e+00 : f32
    %48 = vector.broadcast %cst_33 : f32 to vector<4x1x4xf32>
    %49 = vector.extract_strided_slice %9 {offsets = [1, 0, 0], sizes = [4, 16, 4], strides = [1, 1, 1]} : vector<6x16x4xf32> to vector<4x16x4xf32>
    %c0_34 = arith.constant 0 : index
    %c0_35 = arith.constant 0 : index
    %c0_36 = arith.constant 0 : index
    %50 = vector.load %arg11[%c0_34, %c0_35, %c0_36] : memref<4x16x16xf32, #tpu.memory_space<vmem>>, vector<4x16x4xf32>
    tpu.vector_store %arg11[%c0_34, %c0_35, %c0_36], %49 {strides = array<i32>} : memref<4x16x16xf32, #tpu.memory_space<vmem>>, vector<4x16x4xf32>,
    %51 = vector.extract_strided_slice %9 {offsets = [1, 1, 0], sizes = [4, 15, 4], strides = [1, 1, 1]} : vector<6x16x4xf32> to vector<4x15x4xf32>
    %52 = tpu.concatenate %51, %48 in 1 : vector<4x15x4xf32>, vector<4x1x4xf32> -> vector<4x16x4xf32>
    %c0_37 = arith.constant 0 : index
    %c0_38 = arith.constant 0 : index
    %c4 = arith.constant 4 : index
    %53 = vector.load %arg11[%c0_37, %c0_38, %c4] : memref<4x16x16xf32, #tpu.memory_space<vmem>>, vector<4x16x4xf32>
    tpu.vector_store %arg11[%c0_37, %c0_38, %c4], %52 {strides = array<i32>} : memref<4x16x16xf32, #tpu.memory_space<vmem>>, vector<4x16x4xf32>,
    %54 = vector.extract_strided_slice %9 {offsets = [2, 0, 0], sizes = [4, 16, 4], strides = [1, 1, 1]} : vector<6x16x4xf32> to vector<4x16x4xf32>
    %c0_39 = arith.constant 0 : index
    %c0_40 = arith.constant 0 : index
    %c8 = arith.constant 8 : index
    %55 = vector.load %arg11[%c0_39, %c0_40, %c8] : memref<4x16x16xf32, #tpu.memory_space<vmem>>, vector<4x16x4xf32>
    tpu.vector_store %arg11[%c0_39, %c0_40, %c8], %54 {strides = array<i32>} : memref<4x16x16xf32, #tpu.memory_space<vmem>>, vector<4x16x4xf32>,
    %56 = vector.extract_strided_slice %9 {offsets = [2, 1, 0], sizes = [4, 15, 4], strides = [1, 1, 1]} : vector<6x16x4xf32> to vector<4x15x4xf32>
    %57 = tpu.concatenate %56, %48 in 1 : vector<4x15x4xf32>, vector<4x1x4xf32> -> vector<4x16x4xf32>
    %c0_41 = arith.constant 0 : index
    %c0_42 = arith.constant 0 : index
    %c12 = arith.constant 12 : index
    %58 = vector.load %arg11[%c0_41, %c0_42, %c12] : memref<4x16x16xf32, #tpu.memory_space<vmem>>, vector<4x16x4xf32>
    tpu.vector_store %arg11[%c0_41, %c0_42, %c12], %57 {strides = array<i32>} : memref<4x16x16xf32, #tpu.memory_space<vmem>>, vector<4x16x4xf32>,
    %c3_i32 = arith.constant 3 : i32
    %59 = arith.cmpi eq, %arg1, %c3_i32 : i32
    %60 = arith.extui %59 : i1 to i32
    %c0_i32 = arith.constant 0 : i32
    %61 = arith.cmpi ne, %60, %c0_i32 : i32
    scf.if %61 {
      %cst_64 = arith.constant 0.000000e+00 : f32
      %86 = vector.broadcast %cst_64 : f32 to vector<1x16x8xf32>
      %c3 = arith.constant 3 : index
      %c0_65 = arith.constant 0 : index
      %c8_66 = arith.constant 8 : index
      %87 = vector.load %arg11[%c3, %c0_65, %c8_66] : memref<4x16x16xf32, #tpu.memory_space<vmem>>, vector<1x16x8xf32>
      tpu.vector_store %arg11[%c3, %c0_65, %c8_66], %86 {strides = array<i32>} : memref<4x16x16xf32, #tpu.memory_space<vmem>>, vector<1x16x8xf32>,
    } else {
    }
    %c0_43 = arith.constant 0 : index
    %c0_44 = arith.constant 0 : index
    %c0_45 = arith.constant 0 : index
    %62 = vector.load %arg11[%c0_43, %c0_44, %c0_45] : memref<4x16x16xf32, #tpu.memory_space<vmem>>, vector<4x16x16xf32>
    %63 = vector.shape_cast %62 : vector<4x16x16xf32> to vector<64x16xf32>
    %c0_46 = arith.constant 0 : index
    %c0_47 = arith.constant 0 : index
    %64 = vector.load %arg5[%c0_46, %c0_47] : memref<16x8xf32, #tpu.memory_space<vmem>>, vector<16x8xf32>
    %cst_48 = arith.constant dense<0.000000e+00> : vector<64x8xf32>
    %65 = tpu.matmul %63, %64, %cst_48 {dimension_numbers = #tpu.dot_dimension_numbers<[1], [0], [0], [1], [0, 0, 1, 1], [], []>} : vector<64x16xf32>, vector<16x8xf32>, vector<64x8xf32> -> vector<64x8xf32>
    %c0_49 = arith.constant 0 : index
    %c0_50 = arith.constant 0 : index
    %66 = vector.load %arg7[%c0_49, %c0_50] : memref<1x8xf32, #tpu.memory_space<vmem>>, vector<1x8xf32>
    %67 = vector.broadcast %66 : vector<1x8xf32> to vector<64x8xf32>
    %68 = arith.addf %65, %67 : vector<64x8xf32>
    %cst_51 = arith.constant 0.000000e+00 : f32
    %69 = vector.broadcast %cst_51 : f32 to vector<64x8xf32>
    %70 = arith.maximumf %68, %69 : vector<64x8xf32>
    %71 = vector.shape_cast %70 : vector<64x8xf32> to vector<4x16x8xf32>
    %72 = vector.extract_strided_slice %71 {offsets = [0, 0, 0], sizes = [4, 16, 4], strides = [1, 1, 1]} : vector<4x16x8xf32> to vector<4x16x4xf32>
    %73 = arith.addf %40, %72 : vector<4x16x4xf32>
    %cst_52 = arith.constant 0.000000e+00 : f32
    %74 = vector.broadcast %cst_52 : f32 to vector<4x16x4xf32>
    %75 = arith.maximumf %73, %74 : vector<4x16x4xf32>
    %c0_53 = arith.constant 0 : index
    %c0_54 = arith.constant 0 : index
    %c0_55 = arith.constant 0 : index
    %c0_56 = arith.constant 0 : index
    %c0_57 = arith.constant 0 : index
    %76 = vector.load %arg9[%c0_53, %c0_54, %c0_55, %c0_56, %c0_57] : memref<1x4x2x16x4xf32, #tpu.memory_space<vmem>>, vector<1x4x1x16x4xf32>
    %77 = vector.shape_cast %76 : vector<1x4x1x16x4xf32> to vector<4x16x4xf32>
    %78 = vector.shape_cast %75 : vector<4x16x4xf32> to vector<1x4x1x16x4xf32>
    tpu.vector_store %arg9[%c0_53, %c0_54, %c0_55, %c0_56, %c0_57], %78 {strides = array<i32>} : memref<1x4x2x16x4xf32, #tpu.memory_space<vmem>>, vector<1x4x1x16x4xf32>,
    %79 = vector.extract_strided_slice %71 {offsets = [0, 0, 4], sizes = [4, 16, 4], strides = [1, 1, 1]} : vector<4x16x8xf32> to vector<4x16x4xf32>
    %80 = arith.addf %47, %79 : vector<4x16x4xf32>
    %cst_58 = arith.constant 0.000000e+00 : f32
    %81 = vector.broadcast %cst_58 : f32 to vector<4x16x4xf32>
    %82 = arith.maximumf %80, %81 : vector<4x16x4xf32>
    %c0_59 = arith.constant 0 : index
    %c0_60 = arith.constant 0 : index
    %c1_61 = arith.constant 1 : index
    %c0_62 = arith.constant 0 : index
    %c0_63 = arith.constant 0 : index
    %83 = vector.load %arg9[%c0_59, %c0_60, %c1_61, %c0_62, %c0_63] : memref<1x4x2x16x4xf32, #tpu.memory_space<vmem>>, vector<1x4x1x16x4xf32>
    %84 = vector.shape_cast %83 : vector<1x4x1x16x4xf32> to vector<4x16x4xf32>
    %85 = vector.shape_cast %82 : vector<4x16x4xf32> to vector<1x4x1x16x4xf32>
    tpu.vector_store %arg9[%c0_59, %c0_60, %c1_61, %c0_62, %c0_63], %85 {strides = array<i32>} : memref<1x4x2x16x4xf32, #tpu.memory_space<vmem>>, vector<1x4x1x16x4xf32>,
    return
  }
  func.func @transform_0(%arg0: i32, %arg1: i32) -> (i32, i32, i32, i32) {
    %c0_i32 = arith.constant 0 : i32
    %c0_i32_0 = arith.constant 0 : i32
    %c0_i32_1 = arith.constant 0 : i32
    return %arg0, %arg1, %c0_i32, %c0_i32_0 : i32, i32, i32, i32
  }
  func.func @transform_1(%arg0: i32, %arg1: i32) -> (i32, i32, i32, i32) {
    %c4_i32 = arith.constant 4 : i32
    %0 = arith.muli %arg1, %c4_i32 : i32
    %c1_i32 = arith.constant 1 : i32
    %1 = arith.subi %0, %c1_i32 : i32
    %c0_i32 = arith.constant 0 : i32
    %2 = arith.maxsi %1, %c0_i32 : i32
    %c0_i32_0 = arith.constant 0 : i32
    %c0_i32_1 = arith.constant 0 : i32
    %c0_i32_2 = arith.constant 0 : i32
    return %arg0, %2, %c0_i32_0, %c0_i32_1 : i32, i32, i32, i32
  }
  func.func @transform_2(%arg0: i32, %arg1: i32) -> (i32, i32, i32, i32) {
    %c1_i32 = arith.constant 1 : i32
    %0 = arith.addi %arg1, %c1_i32 : i32
    %c4_i32 = arith.constant 4 : i32
    %1 = arith.muli %0, %c4_i32 : i32
    %c15_i32 = arith.constant 15 : i32
    %2 = arith.minsi %1, %c15_i32 : i32
    %c0_i32 = arith.constant 0 : i32
    %c0_i32_0 = arith.constant 0 : i32
    %c0_i32_1 = arith.constant 0 : i32
    return %arg0, %2, %c0_i32, %c0_i32_0 : i32, i32, i32, i32
  }
  func.func @transform_3(%arg0: i32, %arg1: i32) -> (i32, i32) {
    %c0_i32 = arith.constant 0 : i32
    %c0_i32_0 = arith.constant 0 : i32
    %c0_i32_1 = arith.constant 0 : i32
    return %c0_i32, %c0_i32_0 : i32, i32
  }
  func.func @transform_4(%arg0: i32, %arg1: i32) -> (i32, i32) {
    %c0_i32 = arith.constant 0 : i32
    %c0_i32_0 = arith.constant 0 : i32
    %c0_i32_1 = arith.constant 0 : i32
    return %c0_i32, %c0_i32_0 : i32, i32
  }
  func.func @transform_5(%arg0: i32, %arg1: i32) -> (i32, i32) {
    %c0_i32 = arith.constant 0 : i32
    %c0_i32_0 = arith.constant 0 : i32
    %c0_i32_1 = arith.constant 0 : i32
    return %c0_i32, %c0_i32_0 : i32, i32
  }
  func.func @transform_6(%arg0: i32, %arg1: i32) -> (i32, i32) {
    %c0_i32 = arith.constant 0 : i32
    %c0_i32_0 = arith.constant 0 : i32
    %c0_i32_1 = arith.constant 0 : i32
    return %c0_i32, %c0_i32_0 : i32, i32
  }
  func.func @transform_7(%arg0: i32, %arg1: i32) -> (i32, i32, i32, i32, i32) {
    %c0_i32 = arith.constant 0 : i32
    %c0_i32_0 = arith.constant 0 : i32
    %c0_i32_1 = arith.constant 0 : i32
    %c0_i32_2 = arith.constant 0 : i32
    return %arg0, %arg1, %c0_i32, %c0_i32_0, %c0_i32_1 : i32, i32, i32, i32, i32
  }
}

</mosaic_0001>

<bundles_post_ra>
// kernel: tpu_custom_call.1
= control target key start
LH: loop header
LB: loop body
LE: loop exit
PB: predicated region body
PF: predicated region fallthrough
CT: control target
= control target key end

     0   :  { %s1695_s24 = smov 0   ;;  %s1697_s25 = smov 0   ;;  %s2164_s0 = inlined_call_operand.vmem [shape: f32[2,16,16,4], index: 0, kind: input, shape index: {}]   ;;  %s2165_s1 = inlined_call_operand.vmem [shape: f32[2,16,16,4], index: 1, kind: input, shape index: {}]   ;;  %s2166_s2 = inlined_call_operand.vmem [shape: f32[2,16,16,4], index: 2, kind: input, shape index: {}]   ;;  %s2167_s3 = inlined_call_operand.vmem [shape: f32[16,8], index: 3, kind: input, shape index: {}]   ;;  %s2168_s4 = inlined_call_operand.vmem [shape: f32[4,2], index: 4, kind: input, shape index: {}]   ;;  %s2169_s5 = inlined_call_operand.vmem [shape: f32[1,8], index: 5, kind: input, shape index: {}]   ;;  %s2170_s6 = inlined_call_operand.vmem [shape: f32[1,2], index: 6, kind: input, shape index: {}]   ;;  %s2171_s7 = inlined_call_operand.vmem [shape: f32[2,16,2,16,4], index: 7, kind: output, shape index: {}]  }
   0x1   :  { %s1699_s26 = smov 0   ;;  %s1701_s27 = smov 0  }
   0x2   :  { %s1703_s28 = smov 0  }
   0x3 LB: > { %s26_s29 = sadd.s32 1, %s1639_s26  ;;  %s29_s30 = sadd.s32 1, %s1643_s27  ;;  %s1647_s28 = sphi %s1703_s28, %s17_s28   ;;  %s1643_s27 = sphi %s1701_s27, %s2176_s27   ;;  %s1639_s26 = sphi %s1699_s26, %s2175_s26   ;;  %s1635_s25 = sphi %s1697_s25, %s2174_s25   ;;  %s1631_s24 = sphi %s1695_s24, %s2173_s24  }
   0x4   : > { %p27_p0 = scmp.ge.s32.totalorder %s26_s29, 4  ;;  %p1434_p1 = scmp.ge.s32.totalorder %s1647_s28, 1 }
   0x5   : > { %p323_p2 = scmp.lt.s32.totalorder %s1647_s28, 9 }
   0x6   : > { %s2178_s29 = smov (%p27_p0, %s26_s29), 0  ;;  %s2180_s30 = smov (!%p27_p0, %s29_s30), %s1643_s27 }
   0x7   : > { %p324_p3 = pnand %p1434_p1, %p323_p2  ;;  %p31_p4 = scmp.ge.s32.totalorder %s2180_s30, 2 }
   0x8   : > { %s1731_s10 = sshll.u32 (!%p324_p3), %s1631_s24, 2  ;;  %p392_p5 = scmp.lt.s32.totalorder (!%p324_p3), %s1635_s25, 1 }
   0x9   : > { %s2182_s30 = smov (%p31_p4, %s2180_s30), 0  ;;  %327 = sbr.rel (%p324_p3) target bundleno = 728 (0x2d8), region = 48 }
   0xa   : > { %p394_p6 = scmp.lt.s32.totalorder (!%p324_p3), %s1731_s10, 15  ;;  %s1440_s11 = sadd.s32 (!%p324_p3), 4294967295, %s1731_s10 }
   0xb   : > { %p404_p7 = scmp.gt.s32.totalorder (!%p324_p3), %s1440_s11, 0  ;;  %p1441_p8 = scmp.lt.s32.totalorder (!%p324_p3), %s1440_s11, 15 }
   0xc   : > { %s1501_s9 = sadd.s32 (!%p324_p3), 4, %s1731_s10  ;;  %s1649_s20 = smov (!%p324_p3), 8  }
   0xd   : > { %p1757_p9 = scmp.lt.s32.totalorder (!%p324_p3), %s1501_s9, 15  ;;  %p1474_p10 = scmp.ne.s32.totalorder (!%p324_p3), %s1631_s24, 3 }
   0xe   : > { %v486_v0 = vld [vmem:[%s2168_s4] sm:$0xf]  ;;  %vm530_vm0 = vcmask 1043456   ;;  %s2184_s25 = smov (!%p392_p5, %s1635_s25), 1  ;;  %vm456_vm1 = vcmask 31744   ;;  %vm708_vm2 = vcmask 1046528  }
   0xf   : > { %1525 = vmatprep.subr.msk.mxu0 %vm530_vm0, %v486_v0  ;;  %1561 = vmatprep.subr.msk.mxu1 %vm530_vm0, %v486_v0  ;;  %s395_s12 = scalar_select %p394_p6, %s1731_s10, 15  ;;  %vm958_vm3 = vcmask 64544   ;;  %vm991_vm4 = vcmask 97344   ;;  %vm1030_vm5 = vcmask 130144   ;;  %vm671_vm6 = vcmask 1040384  }
  0x10   : > { %1526 = vmatpush3.msk.msra.mxu0 %vm530_vm0, %v486_v0  ;;  %1562 = vmatpush3.msk.msra.mxu1 %vm530_vm0, %v486_v0  ;;  %s1736_s13 = sshll.u32 %s2184_s25, 5  ;;  %s1458_s18 = sshll.u32 %s2184_s25, 6  ;;  %vm853_vm7 = vcmask 15360  }
  0x11   : > { %s1436_s14 = sshll.u32 %s395_s12, 1  ;;  %s1457_s16 = sshll.u32 %s395_s12, 2 }
  0x12   : > { %s398_s15 = sadd.s32 %s1736_s13, %s1436_s14  ;;  %s443_s22 = sadd.s32 %s1458_s18, %s1457_s16 }
  0x13   : > { %s1438_s17 = sshll.u32 %s398_s15, 3  ;;  %s1459_s8 = sshll.u32 %s443_s22, 3 }
  0x14   : > { %s400_s21 = scalar_lea.vmem %s2164_s0, %s1438_s17  ;;  %s1753_s12 = scalar_lea.vmem %s2171_s7, %s1459_s8 }
  0x15   : > { %s405_s23 = scalar_select %p404_p7, %s1440_s11, 0  ;;  %v447_v1 = vld [vmem:[%s400_s21] sm:$0xff]  ;;  %v448_v2 = vld [vmem:[%s400_s21 + $0x8] sm:$0xff]  ;;  %v449_v3 = vld [vmem:[%s400_s21 + $0x10] sm:$0xff] }
  0x16   : > { %457 = vst.msk [vmem:[#allocation2 + $0x10] sm:$0xff] %vm456_vm1, %v447_v1  ;;  %458 = vst.msk [vmem:[#allocation2 + $0x18] sm:$0xff] %vm456_vm1, %v448_v2  ;;  %v450_v4 = vld [vmem:[%s400_s21 + $0x18] sm:$0xff]  ;;  %v451_v5 = vld [vmem:[%s400_s21 + $0x20] sm:$0xff]  ;;  %s2188_s9 = smov (!%p1757_p9, %s1501_s9), 15  ;;  %s1650_s8 = smov 4  }
  0x17   : > { %459 = vst.msk [vmem:[#allocation2 + $0x20] sm:$0xff] %vm456_vm1, %v449_v3  ;;  %v452_v6 = vld [vmem:[%s400_s21 + $0x28] sm:$0xff]  ;;  %s2186_s23 = smov (!%p1441_p8, %s405_s23), 15  ;;  %460 = vst.msk [vmem:[#allocation2 + $0x28] sm:$0xff] %vm456_vm1, %v450_v4  ;;  %v453_v7 = vld [vmem:[%s400_s21 + $0x30] sm:$0xff]  ;;  %s2190_s9 = smov (!%p1757_p9, %s2188_s9), 15 }
  0x18   : > { %461 = vst.msk [vmem:[#allocation2 + $0x30] sm:$0xff] %vm456_vm1, %v451_v5  ;;  %462 = vst.msk [vmem:[#allocation2 + $0x38] sm:$0xff] %vm456_vm1, %v452_v6  ;;  %v454_v8 = vld [vmem:[%s400_s21 + $0x38] sm:$0xff]  ;;  %s1446_s14 = sshll.u32 %s2186_s23, 1  ;;  %s1453_s21 = sshll.u32 %s2190_s9, 1 }
  0x19   : > { %463 = vst.msk [vmem:[#allocation2 + $0x40] sm:$0xff] %vm456_vm1, %v453_v7  ;;  %464 = vst.msk [vmem:[#allocation2 + $0x48] sm:$0xff] %vm456_vm1, %v454_v8  ;;  %s412_s15 = sadd.s32 %s1446_s14, %s1736_s13  ;;  %s429_s22 = sadd.s32 %s1453_s21, %s1736_s13  ;;  %v1862_v2 = vld [vmem:[%s2170_s6] ss:$0 sm:$0xff] }
  0x1a   : > { %s1448_s16 = sshll.u32 %s412_s15, 3  ;;  %s1455_s23 = sshll.u32 %s429_s22, 3 }
  0x1b   : > { %s414_s19 = scalar_lea.vmem %s2165_s1, %s1448_s16  ;;  %s431_s14 = scalar_lea.vmem %s2166_s2, %s1455_s23 }
  0x1c   : > { %v465_v9 = vld [vmem:[%s414_s19] sm:$0xff]  ;;  %v466_v10 = vld [vmem:[%s414_s19 + $0x8] sm:$0xff]  ;;  %s1651_s13 = smov 12   ;;  %s1652_s15 = smov 2  }
  0x1d   : > { %v476_v11 = vld [vmem:[#allocation2 + $0x10] sm:$0xff]  ;;  %467 = vst.msk [vmem:[#allocation2] sm:$0xff] %vm456_vm1, %v465_v9  ;;  %468 = vst.msk [vmem:[#allocation2 + $0x8] sm:$0xff] %vm456_vm1, %v466_v10  ;;  %v477_v13 = vld [vmem:[#allocation2 + $0x18] sm:$0xff] }
  0x1e   : > { %v910_v12 = vrot.slane %v476_v11, 1  ;;  %902 = vst.msk [vmem:[#allocation3] sm:$0xff] %vm456_vm1, %v476_v11  ;;  %v478_v14 = vld [vmem:[#allocation2 + $0x20] sm:$0xff]  ;;  %v479_v15 = vld [vmem:[#allocation2 + $0x28] sm:$0xff]  ;;  %903 = vst.msk [vmem:[#allocation3 + $0x8] sm:$0xff] %vm456_vm1, %v477_v13  ;;  %v911_v19 = vrot.slane %v477_v13, 1 }
  0x1f   : > { %904 = vst.msk [vmem:[#allocation3 + $0x10] sm:$0xff] %vm456_vm1, %v478_v14  ;;  %905 = vst.msk [vmem:[#allocation3 + $0x18] sm:$0xff] %vm456_vm1, %v479_v15  ;;  %v480_v16 = vld [vmem:[#allocation2 + $0x30] sm:$0xff]  ;;  %v481_v17 = vld [vmem:[#allocation2 + $0x38] sm:$0xff]  ;;  %969 = vrot.lane.b32.xlu1 %v479_v15, %s1649_s20  ;;  %967 = vrot.lane.b32.xlu0 %v478_v14, %s1649_s20  ;;  %v914_v21 = vrot.slane %v479_v15, 1  ;;  %v913_v24 = vrot.slane %v478_v14, 1 }
  0x20   : > { %v482_v18 = vld [vmem:[#allocation2 + $0x40] sm:$0xff]  ;;  %906 = vst.msk [vmem:[#allocation3 + $0x20] sm:$0xff] %vm456_vm1, %v480_v16  ;;  %907 = vst.msk [vmem:[#allocation3 + $0x28] sm:$0xff] %vm456_vm1, %v481_v17  ;;  %v483_v20 = vld [vmem:[#allocation2 + $0x48] sm:$0xff]  ;;  %v926_v22 = vsel %vm708_vm2, %v911_v19, 0.0  ;;  %v912_v23 = vsel %vm708_vm2, %v910_v12, %v911_v19  ;;  %v917_v26 = vrot.slane %v481_v17, 1 }
  0x21   : > { %908 = vst.msk [vmem:[#allocation3 + $0x30] sm:$0xff] %vm456_vm1, %v482_v18  ;;  %909 = vst.msk [vmem:[#allocation3 + $0x38] sm:$0xff] %vm456_vm1, %v483_v20  ;;  %v927_v25 = vsel %vm708_vm2, %v914_v21, 0.0  ;;  %v469_v28 = vld [vmem:[%s431_s14] sm:$0xff]  ;;  %v915_v30 = vsel %vm708_vm2, %v913_v24, %v914_v21  ;;  %v916_v31 = vrot.slane %v480_v16, 1  ;;  %v470_v32 = vld [vmem:[%s431_s14 + $0x8] sm:$0xff] }
  0x22   : > { %472 = vst.msk [vmem:[#allocation2 + $0x50] sm:$0xff] %vm456_vm1, %v469_v28  ;;  %473 = vst.msk [vmem:[#allocation2 + $0x58] sm:$0xff] %vm456_vm1, %v470_v32  ;;  %v928_v33 = vsel %vm708_vm2, %v917_v26, 0.0  ;;  %v920_v35 = vrot.slane %v483_v20, 1  ;;  %v919_v36 = vrot.slane %v482_v18, 1 }
  0x23   : > { %936 = vrot.lane.b32.xlu1 %v926_v22, %s1650_s8  ;;  %934 = vrot.lane.b32.xlu0 %v912_v23, %s1650_s8  ;;  %v918_v34 = vsel %vm708_vm2, %v916_v31, %v917_v26 }
  0x24   : > { %v474_v27 = vld [vmem:[#allocation2] sm:$0xff]  ;;  %v475_v29 = vld [vmem:[#allocation2 + $0x8] sm:$0xff]  ;;  %v929_v38 = vsel %vm708_vm2, %v920_v35, 0.0  ;;  %v921_v40 = vsel %vm708_vm2, %v919_v36, %v920_v35 }
  0x25   : > { %1527 = vmatprep.mubr.msk.f32.mxu0 %vm456_vm1, %v474_v27 }
  0x26   : > { %1528 = vmatmul.mubr.msk.f32.vlgmr.msra.gmra.mxu0 %vm456_vm1, %v475_v29 }
  0x27   : > { %940 = vrot.lane.b32.xlu1 %v927_v25, %s1650_s8  ;;  %1530 = vmatprep.mubr.msk.f32.mxu0 %vm456_vm1, %v476_v11 }
  0x28   : > { %938 = vrot.lane.b32.xlu0 %v915_v30, %s1650_s8 }
  0x29   : > { %v484_v37 = vld [vmem:[#allocation2 + $0x50] sm:$0xff]  ;;  %v1806_v39 = vld [vmem:[#allocation2 + $0x58] sm:$0xff] }
  0x2a   : > { %1531 = vmatmul.mubr.msk.f32.gmra.mxu0 %vm456_vm1, %v477_v13  ;;  %1542 = vmatprep.mubr.msk.f32.mxu1 %vm456_vm1, %v484_v37  ;;  %v1000_v41 = vrot.slane %v484_v37, 1  ;;  %v1001_v42 = vrot.slane %v1806_v39, 1 }
  0x2b   : > { %944 = vrot.lane.b32.xlu1 %v928_v33, %s1650_s8  ;;  %1533 = vmatprep.mubr.msk.f32.mxu0 %vm456_vm1, %v478_v14 }
  0x2c   : > { %942 = vrot.lane.b32.xlu0 %v918_v34, %s1650_s8  ;;  %1543 = vmatmul.mubr.msk.f32.vlgmr.msra.gmra.mxu1 %vm456_vm1, %v1806_v39  ;;  %v1835_v43 = vsel %vm708_vm2, %v1000_v41, %v1001_v42 }
  0x2e   : > { %1534 = vmatmul.mubr.msk.f32.gmra.mxu0 %vm456_vm1, %v479_v15 }
  0x2f   : > { %1536 = vmatprep.mubr.msk.f32.mxu0 %vm456_vm1, %v480_v16  ;;  %948 = vrot.lane.b32.xlu1 %v929_v38, %s1650_s8 }
  0x30   : > { %946 = vrot.lane.b32.xlu0 %v921_v40, %s1650_s8 }
  0x32   : > { %1537 = vmatmul.mubr.msk.f32.gmra.mxu0 %vm456_vm1, %v481_v17 }
  0x33   : > { %1539 = vmatprep.mubr.msk.f32.mxu0 %vm456_vm1, %v482_v18  ;;  %973 = vrot.lane.b32.xlu1 %v481_v17, %s1649_s20 }
  0x34   : > { %971 = vrot.lane.b32.xlu0 %v480_v16, %s1649_s20 }
  0x36   : > { %1540 = vmatmul.mubr.msk.f32.gmra.mxu0 %vm456_vm1, %v483_v20 }
  0x37   : > { %977 = vrot.lane.b32.xlu1 %v483_v20, %s1649_s20 }
  0x38   : > { %975 = vrot.lane.b32.xlu0 %v482_v18, %s1649_s20 }
  0x3b   : > { %981 = vrot.lane.b32.xlu1 %v1806_v39, %s1649_s20 }
  0x3c   : > { %979 = vrot.lane.b32.xlu0 %v484_v37, %s1649_s20 }
  0x3f   : > { %1008 = vrot.lane.b32.xlu1 %v927_v25, %s1651_s13 }
  0x40   : > { %1006 = vrot.lane.b32.xlu0 %v915_v30, %s1651_s13 }
  0x43   : > { %1012 = vrot.lane.b32.xlu1 %v928_v33, %s1651_s13 }
  0x44   : > { %1010 = vrot.lane.b32.xlu0 %v918_v34, %s1651_s13 }
  0x47   : > { %1016 = vrot.lane.b32.xlu1 %v929_v38, %s1651_s13 }
  0x48   : > { %1014 = vrot.lane.b32.xlu0 %v921_v40, %s1651_s13 }
  0x91   : > { %v970_v44 = vpop.permute.xlu1 %969  ;;  %v968_v45 = vpop.permute.xlu0 %967 }
  0x95   : > { %v937_v46 = vpop.permute.xlu1 %936  ;;  %v935_v47 = vpop.permute.xlu0 %934 }
  0x96   : > { %960 = vst.msk [vmem:[#allocation3 + $0x8] sm:$0xff] %vm958_vm3, %v937_v46  ;;  %959 = vst.msk [vmem:[#allocation3] sm:$0xff] %vm958_vm3, %v935_v47 }
  0x97   : > { %992 = vst.msk [vmem:[#allocation3] sm:$0xff] %vm991_vm4, %v968_v45  ;;  %993 = vst.msk [vmem:[#allocation3 + $0x8] sm:$0xff] %vm991_vm4, %v970_v44 }
  0x99   : > { %v941_v48 = vpop.permute.xlu1 %940 }
  0x9a   : > { %962 = vst.msk [vmem:[#allocation3 + $0x18] sm:$0xff] %vm958_vm3, %v941_v48  ;;  %v939_v49 = vpop.permute.xlu0 %938 }
  0x9b   : > { %961 = vst.msk [vmem:[#allocation3 + $0x10] sm:$0xff] %vm958_vm3, %v939_v49 }
  0x9d   : > { %v945_v50 = vpop.permute.xlu1 %944 }
  0x9e   : > { %964 = vst.msk [vmem:[#allocation3 + $0x28] sm:$0xff] %vm958_vm3, %v945_v50  ;;  %v943_v51 = vpop.permute.xlu0 %942 }
  0x9f   : > { %963 = vst.msk [vmem:[#allocation3 + $0x20] sm:$0xff] %vm958_vm3, %v943_v51 }
  0xa1   : > { %v949_v52 = vpop.permute.xlu1 %948 }
  0xa2   : > { %966 = vst.msk [vmem:[#allocation3 + $0x38] sm:$0xff] %vm958_vm3, %v949_v52  ;;  %v947_v53 = vpop.permute.xlu0 %946 }
  0xa3   : > { %965 = vst.msk [vmem:[#allocation3 + $0x30] sm:$0xff] %vm958_vm3, %v947_v53 }
  0xa5   : > { %v974_v54 = vpop.permute.xlu1 %973 }
  0xa6   : > { %995 = vst.msk [vmem:[#allocation3 + $0x18] sm:$0xff] %vm991_vm4, %v974_v54  ;;  %v972_v55 = vpop.permute.xlu0 %971 }
  0xa7   : > { %994 = vst.msk [vmem:[#allocation3 + $0x10] sm:$0xff] %vm991_vm4, %v972_v55 }
  0xa9   : > { %v978_v56 = vpop.permute.xlu1 %977 }
  0xaa   : > { %997 = vst.msk [vmem:[#allocation3 + $0x28] sm:$0xff] %vm991_vm4, %v978_v56  ;;  %v976_v57 = vpop.permute.xlu0 %975 }
  0xab   : > { %996 = vst.msk [vmem:[#allocation3 + $0x20] sm:$0xff] %vm991_vm4, %v976_v57 }
  0xad   : > { %v982_v58 = vpop.permute.xlu1 %981 }
  0xae   : > { %999 = vst.msk [vmem:[#allocation3 + $0x38] sm:$0xff] %vm991_vm4, %v982_v58  ;;  %v980_v59 = vpop.permute.xlu0 %979 }
  0xaf   : > { %998 = vst.msk [vmem:[#allocation3 + $0x30] sm:$0xff] %vm991_vm4, %v980_v59 }
  0xb1   : > { %v1009_v60 = vpop.permute.xlu1 %1008 }
  0xb2   : > { %1032 = vst.msk [vmem:[#allocation3 + $0x8] sm:$0xff] %vm1030_vm5, %v1009_v60  ;;  %v1007_v61 = vpop.permute.xlu0 %1006 }
  0xb3   : > { %1031 = vst.msk [vmem:[#allocation3] sm:$0xff] %vm1030_vm5, %v1007_v61 }
  0xb5   : > { %v1013_v62 = vpop.permute.xlu1 %1012 }
  0xb6   : > { %1034 = vst.msk [vmem:[#allocation3 + $0x18] sm:$0xff] %vm1030_vm5, %v1013_v62  ;;  %v1011_v63 = vpop.permute.xlu0 %1010 }
  0xb7   : > { %1033 = vst.msk [vmem:[#allocation3 + $0x10] sm:$0xff] %vm1030_vm5, %v1011_v63 }
  0xb9   : > { %v1017_v0 = vpop.permute.xlu1 %1016 }
  0xba   : > { %1036 = vst.msk [vmem:[#allocation3 + $0x28] sm:$0xff] %vm1030_vm5, %v1017_v0  ;;  %v1015_v1 = vpop.permute.xlu0 %1014 }
  0xbb   : > { %1035 = vst.msk [vmem:[#allocation3 + $0x20] sm:$0xff] %vm1030_vm5, %v1015_v1 }
  0xe6   : > { %v1529_v3 = vpop.f32.mrf.mxu0 }
  0xe7   : > { %v606_v4 = vadd.f32 %v1529_v3, %v1862_v2 }
  0xe8   : > { %v600_v5 = vpop.f32.mrf.mxu0 }
  0xe9   : > { %v710_v6 = vrot.slane %v606_v4, 1  ;;  %v1866_v7 = vadd.f32 %v1862_v2, %v600_v5  ;;  %v673_v13 = vrot.slane %v606_v4, 7  ;;  %v1874_v15 = vmul.f32 0.75, %v606_v4 }
  0xea   : > { %v1532_v8 = vpop.f32.mrf.mxu0 }
  0xeb   : > { %v672_v9 = vrot.slane %v1866_v7, 7  ;;  %v709_v10 = vrot.slane %v1866_v7, 1  ;;  %v1871_v11 = vadd.f32 %v1532_v8, %v1862_v2  ;;  %v739_v12 = vsel %vm708_vm2, %v710_v6, %v606_v4 }
  0xec   : > { %v610_v14 = vpop.f32.mrf.mxu0  ;;  %v782_v16 = vmul.f32 0.25, %v739_v12  ;;  %v1544_v20 = vpop.f32.mrf.mxu1  ;;  %v1883_v23 = vmul.f32 0.75, %v1866_v7 }
  0xed   : > { %v713_v17 = vrot.slane %v1871_v11, 1  ;;  %v1878_v18 = vadd.f32 %v1862_v2, %v610_v14  ;;  %v711_v19 = vsel %vm708_vm2, %v709_v10, %v710_v6  ;;  %v674_v25 = vsel %vm671_vm6, %v672_v9, %v673_v13 }
  0xee   : > { %v1535_v21 = vpop.f32.mrf.mxu0  ;;  %v794_v22 = vadd.f32 %v782_v16, %v1874_v15  ;;  %v781_v24 = vmul.f32 0.25, %v711_v19  ;;  %v1889_v26 = vadd.f32 %v1544_v20, %v1862_v2  ;;  %v676_v27 = vrot.slane %v1871_v11, 7  ;;  %v650_v30 = vpop.f32.mrf.mxu1 }
  0xef   : > { %v1893_v28 = vadd.f32 %v1535_v21, %v1862_v2  ;;  %v1896_v29 = vmul.f32 0.75, %v1871_v11  ;;  %v675_v31 = vrot.slane %v1878_v18, 7  ;;  %v712_v32 = vrot.slane %v1878_v18, 1 }
  0xf0   : > { %819 = vrot.lane.b32.xlu0 %v794_v22, %s1652_s15  ;;  %v620_v33 = vpop.f32.mrf.mxu0  ;;  %v793_v34 = vadd.f32 %v781_v24, %v1883_v23  ;;  %v740_v35 = vsel %vm708_vm2, %v713_v17, %v1871_v11  ;;  %v725_v36 = vrot.slane %v1889_v26, 1  ;;  %v1906_v37 = vadd.f32 %v1862_v2, %v650_v30 }
  0xf1   : > { %v1909_v38 = vmul.f32 0.75, %v1878_v18  ;;  %v1911_v40 = vmul.f32 0.25, %v674_v25  ;;  %v688_v41 = vrot.slane %v1889_v26, 7  ;;  %v679_v44 = vrot.slane %v1893_v28, 7 }
  0xf2   : > { %v1916_v45 = vadd.f32 %v1862_v2, %v620_v33  ;;  %v1538_v46 = vpop.f32.mrf.mxu0  ;;  %v784_v47 = vmul.f32 0.25, %v740_v35  ;;  %v724_v48 = vrot.slane %v1906_v37, 1  ;;  %v716_v49 = vrot.slane %v1893_v28, 1 }
  0xf3   : > { %v744_v50 = vsel %vm708_vm2, %v725_v36, %v1889_v26  ;;  %v1923_v51 = vmul.f32 0.75, %v1889_v26  ;;  %v687_v52 = vrot.slane %v1906_v37, 7  ;;  %v1928_v55 = vadd.f32 %v1538_v46, %v1862_v2 }
  0xf4   : > { %v792_v53 = vmul.f32 0.25, %v744_v50  ;;  %v715_v54 = vrot.slane %v1916_v45, 1  ;;  %817 = vrot.lane.b32.xlu0 %v793_v34, %s1652_s15  ;;  %v630_v56 = vpop.f32.mrf.mxu0  ;;  %v678_v57 = vrot.slane %v1916_v45, 7  ;;  %v796_v58 = vadd.f32 %v784_v47, %v1896_v29 }
  0xf5   : > { %v1934_v59 = vadd.f32 %v1862_v2, %v630_v56  ;;  %v726_v60 = vsel %vm708_vm2, %v724_v48, %v725_v36  ;;  %v1939_v63 = vmul.f32 0.75, %v1906_v37  ;;  %v714_v1 = vsel %vm708_vm2, %v712_v32, %v713_v17 }
  0xf6   : > { %v804_v61 = vadd.f32 %v792_v53, %v1923_v51  ;;  %v1541_v62 = vpop.f32.mrf.mxu0  ;;  %v791_v0 = vmul.f32 0.25, %v726_v60  ;;  %v682_v3 = vrot.slane %v1928_v55, 7  ;;  %v783_v6 = vmul.f32 0.25, %v714_v1 }
  0xf7   : > { %v718_v4 = vrot.slane %v1934_v59, 1  ;;  %v1945_v5 = vadd.f32 %v1541_v62, %v1862_v2  ;;  %v719_v8 = vrot.slane %v1928_v55, 1  ;;  %v717_v13 = vsel %vm708_vm2, %v715_v54, %v716_v49 }
  0xf8   : > { %839 = vrot.lane.b32.xlu1 %v804_v61, %s1652_s15  ;;  %v803_v10 = vadd.f32 %v791_v0, %v1939_v63  ;;  %v640_v12 = vpop.f32.mrf.mxu0  ;;  %v741_v14 = vsel %vm708_vm2, %v716_v49, %v1893_v28  ;;  %v681_v16 = vrot.slane %v1934_v59, 7  ;;  %v749_v20 = vmul.f32 0.75, %v1916_v45 }
  0xf9   : > { %v685_v17 = vrot.slane %v1945_v5, 7  ;;  %v641_v19 = vadd.f32 %v1862_v2, %v640_v12  ;;  %v785_v21 = vmul.f32 0.25, %v717_v13  ;;  %v750_v22 = vmul.f32 0.75, %v1893_v28 }
  0xfa   : > { %837 = vrot.lane.b32.xlu0 %v803_v10, %s1652_s15  ;;  %v786_v24 = vmul.f32 0.25, %v741_v14  ;;  %v720_v25 = vsel %vm708_vm2, %v718_v4, %v719_v8  ;;  %v722_v26 = vrot.slane %v1945_v5, 1  ;;  %v795_v32 = vadd.f32 %v783_v6, %v1909_v38 }
  0xfb   : > { %v721_v30 = vrot.slane %v641_v19, 1  ;;  %v787_v33 = vmul.f32 0.25, %v720_v25  ;;  %v797_v34 = vadd.f32 %v785_v21, %v749_v20  ;;  %v751_v2 = vmul.f32 0.75, %v1934_v59 }
  0xfc   : > { %823 = vrot.lane.b32.xlu1 %v796_v58, %s1652_s15  ;;  %v742_v35 = vsel %vm708_vm2, %v719_v8, %v1928_v55  ;;  %v752_v36 = vmul.f32 0.75, %v1928_v55  ;;  %v684_v46 = vrot.slane %v641_v19, 7  ;;  %v798_v47 = vadd.f32 %v786_v24, %v750_v22 }
  0xfd   : > { %v788_v48 = vmul.f32 0.25, %v742_v35  ;;  %v723_v49 = vsel %vm708_vm2, %v721_v30, %v722_v26  ;;  %v799_v50 = vadd.f32 %v787_v33, %v751_v2  ;;  %v753_v53 = vmul.f32 0.75, %v641_v19 }
  0xfe   : > { %825 = vrot.lane.b32.xlu0 %v797_v34, %s1652_s15  ;;  %v789_v54 = vmul.f32 0.25, %v723_v49  ;;  %v689_v56 = vsel %vm671_vm6, %v687_v52, %v688_v41  ;;  %v743_v58 = vsel %vm708_vm2, %v722_v26, %v1945_v5  ;;  %v754_v60 = vmul.f32 0.75, %v1945_v5 }
  0xff   : > { %v768_v61 = vmul.f32 0.25, %v689_v56  ;;  %v770_v62 = vadd.f32 %v1911_v40, %v1874_v15  ;;  %v800_v0 = vadd.f32 %v788_v48, %v752_v36  ;;  %v702_v1 = vsel %vm671_vm6, %v1866_v7, %v672_v9 }
 0x100   : > { %821 = vrot.lane.b32.xlu1 %v795_v32, %s1652_s15  ;;  %v677_v41 = vsel %vm671_vm6, %v675_v31, %v676_v27  ;;  %v707_v4 = vsel %vm671_vm6, %v1906_v37, %v687_v52  ;;  %v801_v5 = vadd.f32 %v789_v54, %v753_v53  ;;  %v757_v40 = vmul.f32 0.25, %v702_v1 }
 0x101   : > { %v1988_v15 = vadd.f32 %v768_v61, %v1923_v51  ;;  %v760_v6 = vmul.f32 0.25, %v677_v41  ;;  %v767_v8 = vmul.f32 0.25, %v707_v4  ;;  %v703_v7 = vsel %vm671_vm6, %v1878_v18, %v675_v31 }
 0x102   : > { %829 = vrot.lane.b32.xlu0 %v799_v50, %s1652_s15  ;;  %v704_v9 = vsel %vm671_vm6, %v1916_v45, %v678_v57  ;;  %v680_v11 = vsel %vm671_vm6, %v678_v57, %v679_v44  ;;  %v769_v27 = vadd.f32 %v757_v40, %v1883_v23  ;;  %v759_v51 = vmul.f32 0.25, %v703_v7 }
 0x103   : > { %v772_v37 = vadd.f32 %v760_v6, %v1896_v29  ;;  %v761_v52 = vmul.f32 0.25, %v704_v9  ;;  %v779_v18 = vadd.f32 %v767_v8, %v1939_v63  ;;  %v762_v31 = vmul.f32 0.25, %v680_v11 }
 0x104   : > { %827 = vrot.lane.b32.xlu1 %v798_v47, %s1652_s15  ;;  %v705_v10 = vsel %vm671_vm6, %v1934_v59, %v681_v16  ;;  %v683_v28 = vsel %vm671_vm6, %v681_v16, %v682_v3  ;;  %v771_v44 = vadd.f32 %v759_v51, %v1909_v38  ;;  %v790_v29 = vmul.f32 0.25, %v743_v58 }
 0x105   : > { %v773_v45 = vadd.f32 %v761_v52, %v749_v20  ;;  %v763_v23 = vmul.f32 0.25, %v705_v10  ;;  %v764_v57 = vmul.f32 0.25, %v683_v28  ;;  %v774_v12 = vadd.f32 %v762_v31, %v750_v22 }
 0x106   : > { %833 = vrot.lane.b32.xlu0 %v801_v5, %s1652_s15  ;;  %v706_v13 = vsel %vm671_vm6, %v641_v19, %v684_v46  ;;  %v686_v63 = vsel %vm671_vm6, %v684_v46, %v685_v17  ;;  %v802_v38 = vadd.f32 %v790_v29, %v754_v60  ;;  %v1004_v16 = vsel %vm708_vm2, %v1001_v42, 0.0 }
 0x107   : > { %v775_v14 = vadd.f32 %v763_v23, %v751_v2  ;;  %v776_v21 = vadd.f32 %v764_v57, %v752_v36  ;;  %v765_v59 = vmul.f32 0.25, %v706_v13  ;;  %v766_v24 = vmul.f32 0.25, %v686_v63 }
 0x108   : > { %831 = vrot.lane.b32.xlu1 %v800_v0, %s1652_s15 }
 0x109   : > { %v777_v55 = vadd.f32 %v765_v59, %v753_v53  ;;  %v2018_v3 = vadd.f32 %v766_v24, %v754_v60 }
 0x10a   : > { %1018 = vrot.lane.b32.xlu0 %v1835_v43, %s1651_s13 }
 0x10c   : > { %835 = vrot.lane.b32.xlu1 %v802_v38, %s1652_s15 }
 0x110   : > { %1020 = vrot.lane.b32.xlu1 %v1004_v16, %s1651_s13 }
 0x162   : > { %v820_v17 = vpop.permute.xlu0 %819 }
 0x163   : > { %v855_v25 = vsel %vm853_vm7, %v770_v62, %v820_v17 }
 0x164   : > { %v875_v32 = vmul.f32 0.25, %v855_v25 }
 0x166   : > { %v818_v19 = vpop.permute.xlu0 %817 }
 0x167   : > { %v854_v34 = vsel %vm853_vm7, %v769_v27, %v818_v19 }
 0x168   : > { %v874_v47 = vmul.f32 0.25, %v854_v34 }
 0x16a   : > { %v840_v20 = vpop.permute.xlu1 %839 }
 0x16b   : > { %v865_v23 = vsel %vm853_vm7, %v1988_v15, %v840_v20 }
 0x16c   : > { %v838_v22 = vpop.permute.xlu0 %837 }
 0x16d   : > { %v864_v62 = vsel %vm853_vm7, %v779_v18, %v838_v22 }
 0x16e   : > { %v824_v26 = vpop.permute.xlu1 %823  ;;  %v892_v52 = vmul.f32 0.25, %v864_v62 }
 0x16f   : > { %v857_v30 = vsel %vm853_vm7, %v772_v37, %v824_v26 }
 0x170   : > { %v867_v43 = vmul.f32 0.75, %v857_v30  ;;  %v826_v33 = vpop.permute.xlu0 %825  ;;  %v877_v41 = vmul.f32 0.25, %v857_v30 }
 0x171   : > { %v858_v39 = vsel %vm853_vm7, %v773_v45, %v826_v33 }
 0x172   : > { %v2031_v42 = vadd.f32 %v875_v32, %v867_v43  ;;  %v822_v2 = vpop.permute.xlu1 %821  ;;  %v868_v35 = vmul.f32 0.75, %v858_v39  ;;  %v878_v36 = vmul.f32 0.25, %v858_v39 }
 0x173   : > { %v856_v46 = vsel %vm853_vm7, %v771_v44, %v822_v2 }
 0x174   : > { %v866_v48 = vmul.f32 0.75, %v856_v46  ;;  %v876_v49 = vmul.f32 0.25, %v856_v46  ;;  %v830_v50 = vpop.permute.xlu0 %829 }
 0x175   : > { %v860_v53 = vsel %vm853_vm7, %v775_v14, %v830_v50  ;;  %v893_v14 = vmul.f32 0.25, %v865_v23 }
 0x176   : > { %v2035_v54 = vadd.f32 %v874_v47, %v866_v48  ;;  %v2037_v56 = vadd.f32 %v876_v49, %v868_v35  ;;  %v2039_v58 = vadd.f32 %v878_v36, %v866_v48  ;;  %v828_v60 = vpop.permute.xlu1 %827  ;;  %v870_v61 = vmul.f32 0.75, %v860_v53 }
 0x177   : > { %v859_v0 = vsel %vm853_vm7, %v774_v12, %v828_v60  ;;  %v880_v1 = vmul.f32 0.25, %v860_v53 }
 0x178   : > { %v869_v4 = vmul.f32 0.75, %v859_v0  ;;  %v879_v5 = vmul.f32 0.25, %v859_v0  ;;  %v2043_v40 = vadd.f32 %v878_v36, %v870_v61  ;;  %v834_v6 = vpop.permute.xlu0 %833 }
 0x179   : > { %v2045_v8 = vadd.f32 %v880_v1, %v868_v35  ;;  %v862_v7 = vsel %vm853_vm7, %v777_v55, %v834_v6 }
 0x17a   : > { %v2048_v9 = vadd.f32 %v877_v41, %v869_v4  ;;  %v2050_v11 = vadd.f32 %v879_v5, %v867_v43  ;;  %v832_v27 = vpop.permute.xlu1 %831  ;;  %v872_v37 = vmul.f32 0.75, %v862_v7  ;;  %v890_v51 = vmul.f32 0.25, %v862_v7 }
 0x17b   : > { %v861_v18 = vsel %vm853_vm7, %v776_v21, %v832_v27 }
 0x17c   : > { %v871_v31 = vmul.f32 0.75, %v861_v18  ;;  %v881_v10 = vmul.f32 0.25, %v861_v18  ;;  %v2053_v28 = vadd.f32 %v880_v1, %v872_v37  ;;  %v2055_v44 = vadd.f32 %v890_v51, %v870_v61  ;;  %v1019_v45 = vpop.permute.xlu0 %1018 }
 0x17d   : > { %v2059_v57 = vadd.f32 %v892_v52, %v872_v37  ;;  %1037 = vst.msk [vmem:[#allocation3 + $0x30] sm:$0xff] %vm1030_vm5, %v1019_v45 }
 0x17e   : > { %v2062_v29 = vadd.f32 %v879_v5, %v871_v31  ;;  %v2064_v12 = vadd.f32 %v881_v10, %v869_v4  ;;  %v836_v13 = vpop.permute.xlu1 %835 }
 0x17f   : > { %v863_v63 = vsel %vm853_vm7, %v2018_v3, %v836_v13  ;;  %1042 = sbr.rel (%p1474_p10) target bundleno = 390 (0x186), region = 52 }
 0x180   : > { %v873_v21 = vmul.f32 0.75, %v863_v63  ;;  %v891_v59 = vmul.f32 0.25, %v863_v63 }
 0x182   : > { %v2068_v24 = vadd.f32 %v881_v10, %v873_v21  ;;  %v2070_v55 = vadd.f32 %v891_v59, %v871_v31  ;;  %v2072_v15 = vadd.f32 %v893_v14, %v873_v21  ;;  %v1021_v38 = vpop.permute.xlu1 %1020 }
 0x183   : > { %1038 = vst.msk [vmem:[#allocation3 + $0x38] sm:$0xff] %vm1030_vm5, %v1021_v38 }
 0x184   : > { %vm1044_vm8 = vcmask 130112   ;;  %v1653_v16 = vmov 0.0  }
 0x185   : > { %1045 = vst.msk [vmem:[#allocation3 + $0x30] sm:$0xff] %vm1044_vm8, %v1653_v16  ;;  %1046 = vst.msk [vmem:[#allocation3 + $0x38] sm:$0xff] %vm1044_vm8, %v1653_v16 }
 0x186 PF: > { %v1056_v3 = vld [vmem:[%s2167_s3 + $0x8] sm:$0xff]  ;;  %v1055_v17 = vld [vmem:[%s2167_s3] sm:$0xff]  ;;  %vm1064_vm9 = vcmask 130048   ;;  %v1049_v22 = vld [vmem:[#allocation3 + $0x10] sm:$0xff]  ;;  %s1654_s21 = smov 124  }
 0x187   : > { %v1047_v19 = vld [vmem:[#allocation3] sm:$0xff]  ;;  %1545 = vmatprep.subr.mxu1 %v1056_v3  ;;  %v1048_v20 = vld [vmem:[#allocation3 + $0x8] sm:$0xff]  ;;  %v1050_v25 = vld [vmem:[#allocation3 + $0x18] sm:$0xff] }
 0x188   : > { %1549 = vmatprep.mubr.msk.f32.mxu1 %vm1064_vm9, %v1047_v19  ;;  %1546 = vmatpush3.msra.mxu1 %v1056_v3  ;;  %v1051_v26 = vld [vmem:[#allocation3 + $0x20] sm:$0xff]  ;;  %v1052_v30 = vld [vmem:[#allocation3 + $0x28] sm:$0xff] }
 0x189   : > { %1547 = vmatprep.subr.mxu1 %v1055_v17  ;;  %v1475_v33 = vld [vmem:[%s2169_s5] ss:$0 sm:$0xff] }
 0x18a   : > { %1548 = vmatpush3.msra.mxu1 %v1055_v17 }
 0x18b   : > { %1550 = vmatmul.mubr.msk.f32.vlgmr.msra.gmra.mxu1 %vm1064_vm9, %v1048_v20 }
 0x18c   : > { %1552 = vmatprep.mubr.msk.f32.mxu1 %vm1064_vm9, %v1049_v22  ;;  %v1053_v32 = vld [vmem:[#allocation3 + $0x30] sm:$0xff]  ;;  %v1054_v43 = vld [vmem:[#allocation3 + $0x38] sm:$0xff] }
 0x18f   : > { %1553 = vmatmul.mubr.msk.f32.gmra.mxu1 %vm1064_vm9, %v1050_v25 }
 0x190   : > { %1555 = vmatprep.mubr.msk.f32.mxu1 %vm1064_vm9, %v1051_v26 }
 0x193   : > { %1556 = vmatmul.mubr.msk.f32.gmra.mxu1 %vm1064_vm9, %v1052_v30 }
 0x194   : > { %1558 = vmatprep.mubr.msk.f32.mxu1 %vm1064_vm9, %v1053_v32 }
 0x197   : > { %1559 = vmatmul.mubr.msk.f32.gmra.mxu1 %vm1064_vm9, %v1054_v43 }
 0x24b   : > { %v1551_v34 = vpop.f32.mrf.mxu1 }
 0x24c   : > { %v1161_v39 = vadd.f32 %v1551_v34, %v1475_v33 }
 0x24d   : > { %v1155_v2 = vpop.f32.mrf.mxu1 }
 0x24e   : > { %v1195_v35 = vmax.f32 %v1161_v39, 0.0  ;;  %v1156_v36 = vadd.f32 %v1475_v33, %v1155_v2 }
 0x24f   : > { %v1554_v46 = vpop.f32.mrf.mxu1 }
 0x250   : > { %v1203_v47 = vadd.f32 %v1195_v35, %v2031_v42  ;;  %v1194_v48 = vmax.f32 %v1156_v36, 0.0  ;;  %v1171_v49 = vadd.f32 %v1554_v46, %v1475_v33  ;;  %1236 = vrot.lane.b32.xlu0 %v1195_v35, %s1654_s21 }
 0x251   : > { %v1165_v50 = vpop.f32.mrf.mxu1 }
 0x252   : > { %v1211_v53 = vmax.f32 %v1203_v47, 0.0  ;;  %v1202_v60 = vadd.f32 %v1194_v48, %v2035_v54  ;;  %v1197_v61 = vmax.f32 %v1171_v49, 0.0  ;;  %v1166_v62 = vadd.f32 %v1475_v33, %v1165_v50 }
 0x253   : > { %v1557_v0 = vpop.f32.mrf.mxu1 }
 0x254   : > { %1219 = vst.msk [vmem:[%s1753_s12 + $0x8] sm:$0xff] %vm456_vm1, %v1211_v53  ;;  %v1210_v1 = vmax.f32 %v1202_v60, 0.0  ;;  %v1205_v41 = vadd.f32 %v1197_v61, %v2048_v9  ;;  %v1196_v42 = vmax.f32 %v1166_v62, 0.0  ;;  %v1181_v4 = vadd.f32 %v1557_v0, %v1475_v33  ;;  %1240 = vrot.lane.b32.xlu1 %v1197_v61, %s1654_s21  ;;  %1234 = vrot.lane.b32.xlu0 %v1194_v48, %s1654_s21 }
 0x255   : > { %v1175_v5 = vpop.f32.mrf.mxu1 }
 0x256   : > { %1218 = vst.msk [vmem:[%s1753_s12] sm:$0xff] %vm456_vm1, %v1210_v1  ;;  %v1213_v54 = vmax.f32 %v1205_v41, 0.0  ;;  %v1204_v6 = vadd.f32 %v1196_v42, %v2037_v56  ;;  %v1199_v7 = vmax.f32 %v1181_v4, 0.0  ;;  %v1176_v27 = vadd.f32 %v1475_v33, %v1175_v5 }
 0x257   : > { %v1560_v37 = vpop.f32.mrf.mxu1 }
 0x258   : > { %1221 = vst.msk [vmem:[%s1753_s12 + $0x28] sm:$0xff] %vm456_vm1, %v1213_v54  ;;  %v1212_v9 = vmax.f32 %v1204_v6, 0.0  ;;  %v1207_v51 = vadd.f32 %v1199_v7, %v2062_v29  ;;  %v1198_v52 = vmax.f32 %v1176_v27, 0.0  ;;  %v1191_v18 = vadd.f32 %v1560_v37, %v1475_v33  ;;  %1238 = vrot.lane.b32.xlu1 %v1196_v42, %s1654_s21 }
 0x259   : > { %v1185_v31 = vpop.f32.mrf.mxu1 }
 0x25a   : > { %1220 = vst.msk [vmem:[%s1753_s12 + $0x20] sm:$0xff] %vm456_vm1, %v1212_v9  ;;  %v1215_v10 = vmax.f32 %v1207_v51, 0.0  ;;  %v1206_v56 = vadd.f32 %v1198_v52, %v2043_v40  ;;  %v1201_v45 = vmax.f32 %v1191_v18, 0.0  ;;  %v1186_v23 = vadd.f32 %v1475_v33, %v1185_v31  ;;  %1242 = vrot.lane.b32.xlu0 %v1198_v52, %s1654_s21 }
 0x25c   : > { %1223 = vst.msk [vmem:[%s1753_s12 + $0x48] sm:$0xff] %vm456_vm1, %v1215_v10  ;;  %v1214_v29 = vmax.f32 %v1206_v56, 0.0  ;;  %v1209_v13 = vadd.f32 %v1201_v45, %v2068_v24  ;;  %v1200_v63 = vmax.f32 %v1186_v23, 0.0  ;;  %1244 = vrot.lane.b32.xlu1 %v1199_v7, %s1654_s21 }
 0x25e   : > { %1222 = vst.msk [vmem:[%s1753_s12 + $0x40] sm:$0xff] %vm456_vm1, %v1214_v29  ;;  %v1217_v14 = vmax.f32 %v1209_v13, 0.0  ;;  %v1208_v21 = vadd.f32 %v1200_v63, %v2053_v28  ;;  %1246 = vrot.lane.b32.xlu0 %v1200_v63, %s1654_s21 }
 0x260   : > { %1225 = vst.msk [vmem:[%s1753_s12 + $0x68] sm:$0xff] %vm456_vm1, %v1217_v14  ;;  %v1216_v40 = vmax.f32 %v1208_v21, 0.0  ;;  %1248 = vrot.lane.b32.xlu1 %v1201_v45, %s1654_s21 }
 0x262   : > { %1224 = vst.msk [vmem:[%s1753_s12 + $0x60] sm:$0xff] %vm456_vm1, %v1216_v40 }
 0x2c2   : > { %v1237_v59 = vpop.permute.xlu0 %1236 }
 0x2c3   : > { %v1259_v24 = vadd.f32 %v1237_v59, %v2050_v11 }
 0x2c5   : > { %v1267_v38 = vmax.f32 %v1259_v24, 0.0 }
 0x2c6   : > { %v1241_v16 = vpop.permute.xlu1 %1240  ;;  %v1235_v3 = vpop.permute.xlu0 %1234 }
 0x2c7   : > { %1485 = vst.msk [vmem:[%s1753_s12 + $0x18] sm:$0xff] %vm456_vm1, %v1267_v38  ;;  %v1261_v28 = vadd.f32 %v1241_v16, %v2064_v12  ;;  %v1258_v17 = vadd.f32 %v1235_v3, %v2039_v58 }
 0x2c9   : > { %v1269_v19 = vmax.f32 %v1261_v28, 0.0  ;;  %v1266_v20 = vmax.f32 %v1258_v17, 0.0 }
 0x2ca   : > { %v1239_v22 = vpop.permute.xlu1 %1238 }
 0x2cb   : > { %1487 = vst.msk [vmem:[%s1753_s12 + $0x38] sm:$0xff] %vm456_vm1, %v1269_v19  ;;  %1484 = vst.msk [vmem:[%s1753_s12 + $0x10] sm:$0xff] %vm456_vm1, %v1266_v20  ;;  %v1260_v11 = vadd.f32 %v1239_v22, %v2045_v8 }
 0x2cc   : > { %v1243_v25 = vpop.permute.xlu0 %1242 }
 0x2cd   : > { %v1268_v26 = vmax.f32 %v1260_v11, 0.0  ;;  %v1262_v30 = vadd.f32 %v1243_v25, %v2055_v44 }
 0x2ce   : > { %v1245_v12 = vpop.permute.xlu1 %1244 }
 0x2cf   : > { %1486 = vst.msk [vmem:[%s1753_s12 + $0x30] sm:$0xff] %vm456_vm1, %v1268_v26  ;;  %v1270_v58 = vmax.f32 %v1262_v30, 0.0  ;;  %v1263_v32 = vadd.f32 %v1245_v12, %v2070_v55 }
 0x2d0   : > { %v1247_v43 = vpop.permute.xlu0 %1246 }
 0x2d1   : > { %1488 = vst.msk [vmem:[%s1753_s12 + $0x50] sm:$0xff] %vm456_vm1, %v1270_v58  ;;  %v1271_v33 = vmax.f32 %v1263_v32, 0.0  ;;  %v1264_v34 = vadd.f32 %v1247_v43, %v2059_v57 }
 0x2d2   : > { %v1249_v39 = vpop.permute.xlu1 %1248 }
 0x2d3   : > { %1489 = vst.msk [vmem:[%s1753_s12 + $0x58] sm:$0xff] %vm456_vm1, %v1271_v33  ;;  %v1272_v8 = vmax.f32 %v1264_v34, 0.0  ;;  %v1265_v2 = vadd.f32 %v1249_v39, %v2072_v15 }
 0x2d5   : > { %1490 = vst.msk [vmem:[%s1753_s12 + $0x70] sm:$0xff] %vm456_vm1, %v1272_v8  ;;  %v1273_v44 = vmax.f32 %v1265_v2, 0.0 }
 0x2d7   : > { %1491 = vst.msk [vmem:[%s1753_s12 + $0x78] sm:$0xff] %vm456_vm1, %v1273_v44 }
 0x2d8 PF: > { %s17_s28 = sadd.s32 1, %s1647_s28   ;;  %s2173_s24 = smov %s1639_s26 }
 0x2d9   : > { %p14_p11 = scmp.ge.s32.totalorder %s17_s28, 10   ;;  %s2174_s25 = smov %s1643_s27 }
 0x2da   : > { %s2175_s26 = smov %s2178_s29  ;;  %s2176_s27 = smov %s2182_s30 }
 0x2db   :  { %16 = sbr.rel (!%p14_p11) target bundleno = 3 (0x3), region = 92 }

</bundles_post_ra>
